<compile_context>
chip_gen: v6e
topology: v6e:2x2x1
jax: 0.10.0
libtpu: 0.0.40
codegen_flags: <defaults>
</compile_context>

<pallas_src>
import functools

import jax
import jax.numpy as jnp
from jax.experimental import pallas as pl
from jax.experimental.pallas import tpu as pltpu


_MXU_PRECISION = jax.lax.Precision.HIGHEST
_PRECISION_PASSES = 6          # HIGHEST ~= 6 bf16 MXU passes per f32 matmul
_LANE = 128                    # VMEM lane width (minor dims pad to this)


def eve_kernel(x_ref, w1_ref, b1_ref, w2_ref, b2_ref, w3_ref, b3_ref, o_ref):
    """Fused 3-layer MLP on a (batch_tile, seq_len) activation slab.

    Weights arrive already transposed to (in_features, out_features) and
    biases as (1, out_features) rows, so every layer is h @ W_T + b with the
    batch on sublanes -- identical orientation to the PyTorch reference.
    """
    x = x_ref[...]                                            # (TB, S)

    # Layer 1: (TB, S) @ (S, H) -> (TB, H), ReLU
    h1 = jnp.dot(x, w1_ref[...],
                 preferred_element_type=jnp.float32, precision=_MXU_PRECISION)
    h1 = jnp.maximum(h1 + b1_ref[...], 0.0)

    # Layer 2: (TB, H) @ (H, H) -> (TB, H), ReLU
    h2 = jnp.dot(h1.astype(w2_ref.dtype), w2_ref[...],
                 preferred_element_type=jnp.float32, precision=_MXU_PRECISION)
    h2 = jnp.maximum(h2 + b2_ref[...], 0.0)

    # Layer 3: (TB, H) @ (H, S) -> (TB, S), Sigmoid (computed in f32)
    h3 = jnp.dot(h2.astype(w3_ref.dtype), w3_ref[...],
                 preferred_element_type=jnp.float32, precision=_MXU_PRECISION)
    o_ref[...] = jax.nn.sigmoid(h3 + b3_ref[...]).astype(o_ref.dtype)


def _multi_tensorcore():
    """True on chips whose single device exposes 2 TensorCores (v4/v5p/v7x)."""
    try:
        kind = jax.devices()[0].device_kind.lower()
    except Exception:  # pragma: no cover - detection is best-effort only
        return False
    return any(tag in kind for tag in ("v4", "v5p", "v7"))


def _choose_batch_tile(batch, max_tile, multi_tc):
    """Batch tile in rows (sublanes). Never fabricates padding-only steps."""
    max_tile = max(8, (max_tile // 8) * 8)
    if batch <= max_tile:
        tile = batch                      # single step; block == full dim is legal
        # Two TensorCores share the 'parallel' grid axis: split only when both
        # halves are real work (review: never create a step made of padding).
        if multi_tc and batch >= 1024 and batch % 16 == 0:
            tile = batch // 2
        return tile
    return max_tile                       # multiple of 8; last block may be partial


@functools.partial(jax.jit, static_argnames=("max_batch_tile",))
def eve_forward(x, w1, b1, w2, b2, w3, b3, *, max_batch_tile=2048):
    """x: (batch, seq_len) -> (batch, seq_len), matching Eve.forward.

    Weights are in the PyTorch (out_features, in_features) layout and biases
    are 1-D (out_features,) -- exactly what nn.Linear stores.
    """
    B, S = x.shape
    H = w1.shape[0]
    itemsize = jnp.dtype(x.dtype).itemsize

    tile = _choose_batch_tile(B, max_batch_tile, _multi_tensorcore())
    grid = (pl.cdiv(B, tile),)

    # One-time, tiny (<= HxH) weight transposes; no per-batch HBM passes.
    w1t, w2t, w3t = w1.T, w2.T, w3.T                  # (S,H), (H,H), (H,S)
    b1r, b2r, b3r = b1.reshape(1, -1), b2.reshape(1, -1), b3.reshape(1, -1)

    weight_bytes = sum(int(a.size) * jnp.dtype(a.dtype).itemsize
                       for a in (w1, b1, w2, b2, w3, b3))

    # VMEM working set (activation buffers pad their minor dim to 128 lanes):
    #   x/out tiles double-buffered + live f32 intermediates + weights.
    act_row_bytes = _LANE * 4
    est = (2 * 2 * tile * act_row_bytes               # x + out, double-buffered
           + 4 * tile * act_row_bytes                 # h1/h2/h3 (+ slack), f32
           + 2 * weight_bytes
           + (4 << 20))                               # compiler scratch margin
    vmem_limit = int(min(40 << 20, max(16 << 20, est)))   # << v7x 64 MiB physical

    cost = pl.CostEstimate(
        # Advisory: scale by the HIGHEST-precision MXU pass multiplier.
        flops=_PRECISION_PASSES * 2 * B * (S * H + H * H + H * S),
        transcendentals=B * S,                        # sigmoid
        bytes_accessed=2 * B * S * itemsize + weight_bytes,   # read x + write out
    )

    out = pl.pallas_call(
        eve_kernel,
        out_shape=jax.ShapeDtypeStruct((B, S), x.dtype),
        grid=grid,
        in_specs=[
            pl.BlockSpec((tile, S), lambda i: (i, 0)),   # x tile (natural layout)
            pl.BlockSpec((S, H), lambda i: (0, 0)),      # w1^T (VMEM resident)
            pl.BlockSpec((1, H), lambda i: (0, 0)),      # b1
            pl.BlockSpec((H, H), lambda i: (0, 0)),      # w2^T
            pl.BlockSpec((1, H), lambda i: (0, 0)),      # b2
            pl.BlockSpec((H, S), lambda i: (0, 0)),      # w3^T
            pl.BlockSpec((1, S), lambda i: (0, 0)),      # b3
        ],
        out_specs=pl.BlockSpec((tile, S), lambda i: (i, 0)),
        compiler_params=pltpu.CompilerParams(
            dimension_semantics=("parallel",),
            vmem_limit_bytes=vmem_limit,
        ),
        cost_estimate=cost,
    )(x, w1t, b1r, w2t, b2r, w3t, b3r)

    return out


# ----------------------------- init & reference -----------------------------

def xavier_uniform(key, fan_out, fan_in, dtype=jnp.float32):
    """torch.nn.init.xavier_uniform_ on a (out_features, in_features) weight."""
    limit = float(jnp.sqrt(6.0 / (fan_in + fan_out)))
    return jax.random.uniform(key, (fan_out, fan_in), dtype, -limit, limit)


def linear_bias(key, fan_out, fan_in, dtype=jnp.float32):
    """Default nn.Linear bias init: U(-1/sqrt(fan_in), 1/sqrt(fan_in))."""
    bound = 1.0 / float(jnp.sqrt(jnp.asarray(fan_in, jnp.float32)))
    return jax.random.uniform(key, (fan_out,), dtype, -bound, bound)


def init_eve_params(key, seq_len, hidden, dtype=jnp.float32):
    k = jax.random.split(key, 6)
    w1 = xavier_uniform(k[0], hidden, seq_len, dtype)
    b1 = linear_bias(k[1], hidden, seq_len, dtype)
    w2 = xavier_uniform(k[2], hidden, hidden, dtype)
    b2 = linear_bias(k[3], hidden, hidden, dtype)
    w3 = xavier_uniform(k[4], seq_len, hidden, dtype)
    b3 = linear_bias(k[5], seq_len, hidden, dtype)
    return w1, b1, w2, b2, w3, b3


def eve_reference(x, w1, b1, w2, b2, w3, b3):
    """Pure-JAX reference in the PyTorch orientation (weights are (out, in))."""
    dot = functools.partial(jnp.dot, precision=_MXU_PRECISION)
    h = jnp.maximum(dot(x, w1.T) + b1, 0.0)
    h = jnp.maximum(dot(h, w2.T) + b2, 0.0)
    return jax.nn.sigmoid(dot(h, w3.T) + b3)


if __name__ == "__main__":
    # Small config consistent with the module: cfg.seq_len=8, cfg.hidden=32.
    batch, seq_len, hidden = 8, 8, 32

    key = jax.random.PRNGKey(0)
    k_x, k_p = jax.random.split(key)

    x = jax.random.normal(k_x, (batch, seq_len), jnp.float32)
    params = init_eve_params(k_p, seq_len, hidden)

    out = eve_forward(x, *params)
    out = jax.block_until_ready(out)

    ref = eve_reference(x, *params)
    assert out.shape == (batch, seq_len)
    assert jnp.allclose(out, ref, atol=1e-5, rtol=1e-5), "mismatch vs reference"

    print("KERNEL_OK")
</pallas_src>

<mosaic_0001>
module attributes {stable_mosaic.version = 11 : i64} {
  func.func @eve_kernel(%arg0: i32, %arg1: memref<8x8xf32, #tpu.memory_space<vmem>>, %arg2: memref<8x32xf32, #tpu.memory_space<vmem>>, %arg3: memref<1x32xf32, #tpu.memory_space<vmem>>, %arg4: memref<32x32xf32, #tpu.memory_space<vmem>>, %arg5: memref<1x32xf32, #tpu.memory_space<vmem>>, %arg6: memref<32x8xf32, #tpu.memory_space<vmem>>, %arg7: memref<1x8xf32, #tpu.memory_space<vmem>>, %arg8: memref<8x8xf32, #tpu.memory_space<vmem>>) attributes {dimension_semantics = [#tpu.dimension_semantics<parallel>], iteration_bounds = array<i64: 1>, scalar_prefetch = 0 : i64, scratch_operands = 0 : i64, tpu.core_type = #tpu.core_type<tc>, window_params = [{transform_indices = @transform_0, window_bounds = array<i64: 8, 8>}, {pipeline_mode = #tpu.pipeline_mode<synchronous>, transform_indices = @transform_1, window_bounds = array<i64: 8, 32>}, {pipeline_mode = #tpu.pipeline_mode<synchronous>, transform_indices = @transform_2, window_bounds = array<i64: 1, 32>}, {pipeline_mode = #tpu.pipeline_mode<synchronous>, transform_indices = @transform_3, window_bounds = array<i64: 32, 32>}, {pipeline_mode = #tpu.pipeline_mode<synchronous>, transform_indices = @transform_4, window_bounds = array<i64: 1, 32>}, {pipeline_mode = #tpu.pipeline_mode<synchronous>, transform_indices = @transform_5, window_bounds = array<i64: 32, 8>}, {pipeline_mode = #tpu.pipeline_mode<synchronous>, transform_indices = @transform_6, window_bounds = array<i64: 1, 8>}, {transform_indices = @transform_7, window_bounds = array<i64: 8, 8>}]} {
    %c0 = arith.constant 0 : index
    %c0_0 = arith.constant 0 : index
    %0 = vector.load %arg1[%c0, %c0_0] : memref<8x8xf32, #tpu.memory_space<vmem>>, vector<8x8xf32>
    %c0_1 = arith.constant 0 : index
    %c0_2 = arith.constant 0 : index
    %1 = vector.load %arg2[%c0_1, %c0_2] : memref<8x32xf32, #tpu.memory_space<vmem>>, vector<8x32xf32>
    %cst = arith.constant dense<0.000000e+00> : vector<8x32xf32>
    %2 = tpu.matmul %0, %1, %cst {dimension_numbers = #tpu.dot_dimension_numbers<[1], [0], [0], [1], [0, 0, 1, 1], [], []>, precision = #tpu.contract_precision<fp32>} : vector<8x8xf32>, vector<8x32xf32>, vector<8x32xf32> -> vector<8x32xf32>
    %c0_3 = arith.constant 0 : index
    %c0_4 = arith.constant 0 : index
    %3 = vector.load %arg3[%c0_3, %c0_4] : memref<1x32xf32, #tpu.memory_space<vmem>>, vector<1x32xf32>
    %4 = vector.broadcast %3 : vector<1x32xf32> to vector<8x32xf32>
    %5 = arith.addf %2, %4 : vector<8x32xf32>
    %cst_5 = arith.constant 0.000000e+00 : f32
    %6 = vector.broadcast %cst_5 : f32 to vector<8x32xf32>
    %7 = arith.maximumf %5, %6 : vector<8x32xf32>
    %c0_6 = arith.constant 0 : index
    %c0_7 = arith.constant 0 : index
    %8 = vector.load %arg4[%c0_6, %c0_7] : memref<32x32xf32, #tpu.memory_space<vmem>>, vector<32x32xf32>
    %cst_8 = arith.constant dense<0.000000e+00> : vector<8x32xf32>
    %9 = tpu.matmul %7, %8, %cst_8 {dimension_numbers = #tpu.dot_dimension_numbers<[1], [0], [0], [1], [0, 0, 1, 1], [], []>, precision = #tpu.contract_precision<fp32>} : vector<8x32xf32>, vector<32x32xf32>, vector<8x32xf32> -> vector<8x32xf32>
    %c0_9 = arith.constant 0 : index
    %c0_10 = arith.constant 0 : index
    %10 = vector.load %arg5[%c0_9, %c0_10] : memref<1x32xf32, #tpu.memory_space<vmem>>, vector<1x32xf32>
    %11 = vector.broadcast %10 : vector<1x32xf32> to vector<8x32xf32>
    %12 = arith.addf %9, %11 : vector<8x32xf32>
    %cst_11 = arith.constant 0.000000e+00 : f32
    %13 = vector.broadcast %cst_11 : f32 to vector<8x32xf32>
    %14 = arith.maximumf %12, %13 : vector<8x32xf32>
    %c0_12 = arith.constant 0 : index
    %c0_13 = arith.constant 0 : index
    %15 = vector.load %arg6[%c0_12, %c0_13] : memref<32x8xf32, #tpu.memory_space<vmem>>, vector<32x8xf32>
    %cst_14 = arith.constant dense<0.000000e+00> : vector<8x8xf32>
    %16 = tpu.matmul %14, %15, %cst_14 {dimension_numbers = #tpu.dot_dimension_numbers<[1], [0], [0], [1], [0, 0, 1, 1], [], []>, precision = #tpu.contract_precision<fp32>} : vector<8x32xf32>, vector<32x8xf32>, vector<8x8xf32> -> vector<8x8xf32>
    %c0_15 = arith.constant 0 : index
    %c0_16 = arith.constant 0 : index
    %17 = vector.load %arg7[%c0_15, %c0_16] : memref<1x8xf32, #tpu.memory_space<vmem>>, vector<1x8xf32>
    %18 = vector.broadcast %17 : vector<1x8xf32> to vector<8x8xf32>
    %19 = arith.addf %16, %18 : vector<8x8xf32>
    %20 = arith.negf %19 : vector<8x8xf32>
    %21 = math.exp %20 : vector<8x8xf32>
    %cst_17 = arith.constant 1.000000e+00 : f32
    %22 = vector.broadcast %cst_17 : f32 to vector<8x8xf32>
    %23 = arith.addf %22, %21 : vector<8x8xf32>
    %24 = arith.divf %22, %23 : vector<8x8xf32>
    %c0_18 = arith.constant 0 : index
    %c0_19 = arith.constant 0 : index
    %25 = vector.load %arg8[%c0_18, %c0_19] : memref<8x8xf32, #tpu.memory_space<vmem>>, vector<8x8xf32>
    tpu.vector_store %arg8[%c0_18, %c0_19], %24 {strides = array<i32>} : memref<8x8xf32, #tpu.memory_space<vmem>>, vector<8x8xf32>,
    return
  }
  func.func @transform_0(%arg0: i32) -> (i32, i32) {
    %c0_i32 = arith.constant 0 : i32
    %c0_i32_0 = arith.constant 0 : i32
    return %arg0, %c0_i32 : i32, i32
  }
  func.func @transform_1(%arg0: i32) -> (i32, i32) {
    %c0_i32 = arith.constant 0 : i32
    %c0_i32_0 = arith.constant 0 : i32
    %c0_i32_1 = arith.constant 0 : i32
    return %c0_i32, %c0_i32_0 : i32, i32
  }
  func.func @transform_2(%arg0: i32) -> (i32, i32) {
    %c0_i32 = arith.constant 0 : i32
    %c0_i32_0 = arith.constant 0 : i32
    %c0_i32_1 = arith.constant 0 : i32
    return %c0_i32, %c0_i32_0 : i32, i32
  }
  func.func @transform_3(%arg0: i32) -> (i32, i32) {
    %c0_i32 = arith.constant 0 : i32
    %c0_i32_0 = arith.constant 0 : i32
    %c0_i32_1 = arith.constant 0 : i32
    return %c0_i32, %c0_i32_0 : i32, i32
  }
  func.func @transform_4(%arg0: i32) -> (i32, i32) {
    %c0_i32 = arith.constant 0 : i32
    %c0_i32_0 = arith.constant 0 : i32
    %c0_i32_1 = arith.constant 0 : i32
    return %c0_i32, %c0_i32_0 : i32, i32
  }
  func.func @transform_5(%arg0: i32) -> (i32, i32) {
    %c0_i32 = arith.constant 0 : i32
    %c0_i32_0 = arith.constant 0 : i32
    %c0_i32_1 = arith.constant 0 : i32
    return %c0_i32, %c0_i32_0 : i32, i32
  }
  func.func @transform_6(%arg0: i32) -> (i32, i32) {
    %c0_i32 = arith.constant 0 : i32
    %c0_i32_0 = arith.constant 0 : i32
    %c0_i32_1 = arith.constant 0 : i32
    return %c0_i32, %c0_i32_0 : i32, i32
  }
  func.func @transform_7(%arg0: i32) -> (i32, i32) {
    %c0_i32 = arith.constant 0 : i32
    %c0_i32_0 = arith.constant 0 : i32
    return %arg0, %c0_i32 : i32, i32
  }
}

</mosaic_0001>

<bundles_post_ra>
// kernel: eve_forward.1
= control target key start
LH: loop header
LB: loop body
LE: loop exit
PB: predicated region body
PF: predicated region fallthrough
CT: control target
= control target key end

     0   :  { %vm36_vm0 = vcmask 64512   ;;  %v1775_v2 = vmov 0.0   ;;  %s2074_s0 = inlined_call_operand.vmem [shape: f32[8,8], index: 0, kind: input, shape index: {}]   ;;  %s2075_s1 = inlined_call_operand.vmem [shape: f32[8,32], index: 1, kind: input, shape index: {}]   ;;  %s2076_s2 = inlined_call_operand.vmem [shape: f32[1,32], index: 2, kind: input, shape index: {}]   ;;  %s2077_s3 = inlined_call_operand.vmem [shape: f32[32,32], index: 3, kind: input, shape index: {}]   ;;  %s2078_s4 = inlined_call_operand.vmem [shape: f32[1,32], index: 4, kind: input, shape index: {}]   ;;  %s2079_s5 = inlined_call_operand.vmem [shape: f32[32,8], index: 5, kind: input, shape index: {}]   ;;  %s2080_s6 = inlined_call_operand.vmem [shape: f32[1,8], index: 6, kind: input, shape index: {}]   ;;  %s2081_s7 = inlined_call_operand.hbm [shape: f32[8,8], index: 7, kind: output, shape index: {}]  }
   0x1   :  { %v28_v0 = vld [vmem:[%s2075_s1] sm:$0xff]  ;;  %1584 = vmatprep.subr.mxu0 %v1775_v2  ;;  %1589 = vmatprep.subr.mxu1 %v1775_v2 }
   0x2   :  { %v27_v1 = vld [vmem:[%s2074_s0] sm:$0xff]  ;;  %v71_v3 = vand.u32 4294901760, %v28_v0 }
   0x3   :  { %v38_v4 = vsel %vm36_vm0, %v27_v1, 0 }
   0x4   :  { %12 = vsyncpa [#allocation3], 0  ;;  %vm1776_vm1 = vmmov 0   ;;  %v106_v5 = vand.u32 4294901760, %v38_v4  ;;  %1585 = vmatpush3.msra.mxu0 %v71_v3  ;;  %v148_v6 = vsub.f32 %v28_v0, %v71_v3  ;;  %v490_v14 = vld [vmem:[%s2077_s3 + $0x18] sm:$0xff]  ;;  %v489_v16 = vld [vmem:[%s2077_s3 + $0x10] sm:$0xff] }
   0x5   :  { %1586 = vmatprep.mubr.msk.f32.mxu0 %vm1776_vm1, %v1775_v2  ;;  %1591 = vmatprep.mubr.msk.f32.mxu1 %vm1776_vm1, %v1775_v2  ;;  %v1852_v15 = vand.u32 4294901760, %v490_v14  ;;  %v1860_v18 = vand.u32 4294901760, %v489_v16  ;;  %v488_v19 = vld [vmem:[%s2077_s3 + $0x8] sm:$0xff]  ;;  %v487_v23 = vld [vmem:[%s2077_s3] sm:$0xff]  ;;  %vm498_vm2 = vcmask 261120   ;;  %v991_v0 = vld [vmem:[%s2079_s5 + $0x18] sm:$0xff] }
   0x6   :  { %1594 = vmatprep.subr.mxu0 %v1775_v2  ;;  %v107_v7 = vsub.f32 %v38_v4, %v106_v5  ;;  %v149_v8 = vand.u32 4294901760, %v148_v6  ;;  %v1871_v22 = vand.u32 4294901760, %v488_v19  ;;  %v1885_v27 = vand.u32 4294901760, %v487_v23  ;;  %v1508_v38 = vld [vmem:[%s2076_s2] ss:$0 sm:$0xff]  ;;  %s1777_s21 = smov [#allocation2]  }
   0x7   :  { %v1858_v17 = vsub.f32 %v490_v14, %v1852_v15  ;;  %v1869_v21 = vsub.f32 %v489_v16, %v1860_v18  ;;  %v1964_v1 = vand.u32 4294901760, %v991_v0  ;;  %s1500_s22 = sshll.u32 %s1777_s21, 4  ;;  %s1501_s22 = int_to_ptr.vmem [resolvable:$true] %s1500_s22 }
   0x8   :  { %v108_v9 = vand.u32 4294901760, %v107_v7  ;;  %v150_v10 = vsub.f32 %v148_v6, %v149_v8  ;;  %v1883_v26 = vsub.f32 %v488_v19, %v1871_v22  ;;  %v1894_v31 = vsub.f32 %v487_v23, %v1885_v27  ;;  %p1758_p1 = scmp.lt.s32.totalorder %s1501_s22, %s1501_s22 }
   0x9   :  { %v608_v20 = vand.u32 4294901760, %v1858_v17  ;;  %v615_v25 = vand.u32 4294901760, %v1869_v21  ;;  %v1970_v4 = vsub.f32 %v991_v0, %v1964_v1 }
   0xa   :  { %v109_v11 = vsub.f32 %v107_v7, %v108_v9  ;;  %v151_v12 = vand.u32 4294901760, %v150_v10  ;;  %v622_v30 = vand.u32 4294901760, %v1883_v26  ;;  %v629_v34 = vand.u32 4294901760, %v1894_v31  ;;  %v988_v10 = vld [vmem:[%s2079_s5] sm:$0xff] }
   0xb   :  { %v609_v24 = vsub.f32 %v1858_v17, %v608_v20  ;;  %v616_v29 = vsub.f32 %v1869_v21, %v615_v25  ;;  %v1997_v14 = vand.u32 4294901760, %v988_v10 }
   0xc   :  { %v110_v13 = vand.u32 4294901760, %v109_v11  ;;  %1590 = vmatpush3.msra.mxu1 %v151_v12  ;;  %v623_v33 = vsub.f32 %v1883_v26, %v622_v30  ;;  %v630_v36 = vsub.f32 %v1894_v31, %v629_v34 }
   0xd   :  { %1592 = vmatmul.mubr.f32.vlgmr.msra.gmra.mxu1 %v106_v5  ;;  %1599 = vmatprep.subr.mxu1 %v1775_v2  ;;  %v610_v28 = vand.u32 4294901760, %v609_v24  ;;  %v617_v32 = vand.u32 4294901760, %v616_v29 }
   0xe   :  { %1587 = vmatmul.mubr.f32.vlgmr.msra.gmra.mxu0 %v110_v13  ;;  %1600 = vmatpush3.msra.mxu1 %v71_v3  ;;  %v624_v35 = vand.u32 4294901760, %v623_v33  ;;  %v631_v37 = vand.u32 4294901760, %v630_v36 }
   0xf   :  { %1595 = vmatpush3.msra.mxu0 %v148_v6  ;;  %1596 = vmatprep.mubr.msk.f32.mxu0 %vm1776_vm1, %v1775_v2  ;;  %v989_v6 = vld [vmem:[%s2079_s5 + $0x8] sm:$0xff] }
  0x10   :  { %1601 = vmatprep.mubr.msk.f32.mxu1 %vm1776_vm1, %v1775_v2  ;;  %1604 = vmatprep.subr.mxu0 %v1775_v2 }
  0x11   :  { %1602 = vmatmul.mubr.f32.vlgmr.msra.gmra.mxu1 %v108_v9  ;;  %1609 = vmatprep.subr.mxu1 %v1775_v2  ;;  %v1983_v9 = vand.u32 4294901760, %v989_v6 }
  0x12   :  { %1597 = vmatmul.mubr.f32.vlgmr.msra.gmra.mxu0 %v107_v7  ;;  %1610 = vmatpush3.msra.mxu1 %v71_v3  ;;  %v990_v3 = vld [vmem:[%s2079_s5 + $0x10] sm:$0xff]  ;;  %v1108_v7 = vand.u32 4294901760, %v1970_v4 }
  0x13   :  { %1605 = vmatpush3.msra.mxu0 %v149_v8  ;;  %1606 = vmatprep.mubr.msk.f32.mxu0 %vm1776_vm1, %v1775_v2  ;;  %v1995_v13 = vsub.f32 %v989_v6, %v1983_v9 }
  0x14   :  { %1611 = vmatprep.mubr.msk.f32.mxu1 %vm1776_vm1, %v1775_v2  ;;  %1625 = vmatprep.subr.mxu1 %v1775_v2  ;;  %v1109_v11 = vsub.f32 %v1970_v4, %v1108_v7 }
  0x15   :  { %1612 = vmatmul.mubr.f32.vlgmr.msra.gmra.mxu1 %v106_v5  ;;  %1614 = vmatprep.subr.mxu0 %v1775_v2 }
  0x16   :  { %1607 = vmatmul.mubr.f32.vlgmr.msra.gmra.mxu0 %v106_v5  ;;  %1633 = vmatprep.mubr.msk.f32.mxu1 %vm1776_vm1, %v1775_v2  ;;  %v1972_v5 = vand.u32 4294901760, %v990_v3 }
  0x17   :  { %1622 = vmatprep.mubr.msk.f32.mxu0 %vm1776_vm1, %v1775_v2  ;;  %1615 = vmatpush3.msra.mxu0 %v1852_v15 }
  0x18   :  { %1616 = vmatprep.subr.mxu0 %v1775_v2  ;;  %1626 = vmatpush3.msra.mxu1 %v610_v28  ;;  %v1981_v8 = vsub.f32 %v990_v3, %v1972_v5 }
  0x19   :  { %1617 = vmatpush3.msra.mxu0 %v1860_v18  ;;  %1627 = vmatprep.subr.mxu1 %v1775_v2 }
  0x1a   :  { %1618 = vmatprep.subr.mxu0 %v1775_v2  ;;  %1628 = vmatpush3.msra.mxu1 %v617_v32  ;;  %v1115_v12 = vand.u32 4294901760, %v1981_v8 }
  0x1b   :  { %1619 = vmatpush3.msra.mxu0 %v1871_v22  ;;  %1629 = vmatprep.subr.mxu1 %v1775_v2 }
  0x1c   :  { %1620 = vmatprep.subr.mxu0 %v1775_v2  ;;  %1630 = vmatpush3.msra.mxu1 %v624_v35  ;;  %v1116_v16 = vsub.f32 %v1981_v8, %v1115_v12 }
  0x1d   :  { %1621 = vmatpush3.msra.mxu0 %v1885_v27  ;;  %1631 = vmatprep.subr.mxu1 %v1775_v2 }
  0x1e   :  { %1636 = vmatprep.subr.mxu0 %v1775_v2  ;;  %1632 = vmatpush3.msra.mxu1 %v631_v37  ;;  %v1117_v19 = vand.u32 4294901760, %v1116_v16 }
  0x1f   :  { %1647 = vmatprep.subr.mxu1 %v1775_v2 }
  0xcd   :  { %v188_v40 = vpop.f32.mrf.mxu1 }
  0xce   :  { %v112_v39 = vpop.f32.mrf.mxu0 }
  0xcf   :  { %v113_v41 = vadd.f32 %v1508_v38, %v112_v39  ;;  %v1593_v43 = vpop.f32.mrf.mxu1 }
  0xd0   :  { %v1588_v42 = vpop.f32.mrf.mxu0 }
  0xd1   :  { %v189_v44 = vadd.f32 %v188_v40, %v113_v41  ;;  %v336_v46 = vpop.f32.mrf.mxu1 }
  0xd2   :  { %v262_v45 = vpop.f32.mrf.mxu0 }
  0xd3   :  { %v263_v47 = vadd.f32 %v262_v45, %v189_v44  ;;  %v1603_v49 = vpop.f32.mrf.mxu1 }
  0xd4   :  { %v1598_v48 = vpop.f32.mrf.mxu0 }
  0xd5   :  { %v337_v50 = vadd.f32 %v336_v46, %v263_v47  ;;  %v482_v52 = vpop.f32.mrf.mxu1 }
  0xd6   :  { %v410_v51 = vpop.f32.mrf.mxu0 }
  0xd7   :  { %v411_v53 = vadd.f32 %v410_v51, %v337_v50  ;;  %v1613_v55 = vpop.f32.mrf.mxu1 }
  0xd8   :  { %v1608_v54 = vpop.f32.mrf.mxu0 }
  0xd9   :  { %v483_v56 = vadd.f32 %v482_v52, %v411_v53 }
  0xdb   :  { %v486_v57 = vmax.f32 %v483_v56, 0.0 }
  0xdd   :  { %v500_v58 = vsel %vm498_vm2, %v486_v57, 0  ;;  %v1510_v57 = vld [vmem:[%s2080_s6] ss:$0 sm:$0xff]  ;;  %s1753_s6 = scalar_lea.vmem %s1501_s22, 128 }
  0xde   :  { %v571_v59 = vand.u32 4294901760, %v500_v58  ;;  %p1754_p0 = scmp.ne.s32.totalorder %s1501_s22, %s1753_s6  ;;  %p1759_p2 = scmp.lt.s32.totalorder %s1753_s6, %s1753_s6 }
  0xe0   :  { %v572_v60 = vsub.f32 %v500_v58, %v571_v59  ;;  %1634 = vmatmul.mubr.f32.vlgmr.msra.gmra.mxu1 %v571_v59  ;;  %p1760_p3 = por %p1759_p2, %p1758_p1 }
  0xe1   :  { %1648 = vmatpush3.msra.mxu1 %v1852_v15  ;;  %1655 = vmatprep.mubr.msk.f32.mxu1 %vm1776_vm1, %v1775_v2 }
  0xe2   :  { %1649 = vmatprep.subr.mxu1 %v1775_v2  ;;  %v573_v61 = vand.u32 4294901760, %v572_v60  ;;  %p1761_p4 = pnand %p1760_p3, %p1754_p0 }
  0xe3   :  { %1650 = vmatpush3.msra.mxu1 %v1860_v18 }
  0xe4   :  { %1651 = vmatprep.subr.mxu1 %v1775_v2  ;;  %v574_v62 = vsub.f32 %v572_v60, %v573_v61 }
  0xe5   :  { %1652 = vmatpush3.msra.mxu1 %v1871_v22 }
  0xe6   :  { %1653 = vmatprep.subr.mxu1 %v1775_v2  ;;  %v575_v63 = vand.u32 4294901760, %v574_v62 }
  0xe7   :  { %1654 = vmatpush3.msra.mxu1 %v1885_v27 }
  0xe8   :  { %1656 = vmatmul.mubr.f32.vlgmr.msra.gmra.mxu1 %v573_v61  ;;  %1669 = vmatprep.subr.mxu1 %v1775_v2 }
  0xe9   :  { %1623 = vmatmul.mubr.f32.vlgmr.msra.gmra.mxu0 %v575_v63  ;;  %1670 = vmatpush3.msra.mxu1 %v1852_v15  ;;  %v1110_v15 = vand.u32 4294901760, %v1109_v11 }
  0xea   :  { %1637 = vmatpush3.msra.mxu0 %v1858_v17  ;;  %1671 = vmatprep.subr.mxu1 %v1775_v2  ;;  %v1122_v17 = vand.u32 4294901760, %v1995_v13 }
  0xeb   :  { %1638 = vmatprep.subr.mxu0 %v1775_v2  ;;  %1672 = vmatpush3.msra.mxu1 %v1860_v18  ;;  %v2006_v18 = vsub.f32 %v988_v10, %v1997_v14 }
  0xec   :  { %1639 = vmatpush3.msra.mxu0 %v1869_v21  ;;  %1673 = vmatprep.subr.mxu1 %v1775_v2 }
  0xed   :  { %1640 = vmatprep.subr.mxu0 %v1775_v2  ;;  %1674 = vmatpush3.msra.mxu1 %v1871_v22  ;;  %v1129_v21 = vand.u32 4294901760, %v2006_v18 }
  0xee   :  { %1641 = vmatpush3.msra.mxu0 %v1883_v26  ;;  %1675 = vmatprep.subr.mxu1 %v1775_v2 }
  0xef   :  { %1642 = vmatprep.subr.mxu0 %v1775_v2  ;;  %1644 = vmatprep.mubr.msk.f32.mxu0 %vm1776_vm1, %v1775_v2  ;;  %v1130_v23 = vsub.f32 %v2006_v18, %v1129_v21 }
  0xf0   :  { %1643 = vmatpush3.msra.mxu0 %v1894_v31  ;;  %1676 = vmatpush3.msra.mxu1 %v1885_v27  ;;  %v1509_v31 = vld [vmem:[%s2078_s4] ss:$0 sm:$0xff] }
  0xf1   :  { %1677 = vmatprep.mubr.msk.f32.mxu1 %vm1776_vm1, %v1775_v2  ;;  %1645 = vmatmul.mubr.f32.vlgmr.msra.gmra.mxu0 %v572_v60  ;;  %v1131_v24 = vand.u32 4294901760, %v1130_v23 }
  0xf2   :  { %1658 = vmatprep.subr.mxu0 %v1775_v2  ;;  %1678 = vmatmul.mubr.f32.vlgmr.msra.gmra.mxu1 %v571_v59 }
  0xf3   :  { %1659 = vmatpush3.msra.mxu0 %v608_v20  ;;  %1666 = vmatprep.mubr.msk.f32.mxu0 %vm1776_vm1, %v1775_v2  ;;  %v1123_v20 = vsub.f32 %v1995_v13, %v1122_v17 }
  0xf4   :  { %1660 = vmatprep.subr.mxu0 %v1775_v2  ;;  %1691 = vmatprep.subr.mxu1 %v1775_v2 }
  0xf5   :  { %1661 = vmatpush3.msra.mxu0 %v615_v25  ;;  %1699 = vmatprep.mubr.msk.f32.mxu1 %vm1776_vm1, %v1775_v2  ;;  %v1124_v22 = vand.u32 4294901760, %v1123_v20 }
  0xf6   :  { %1662 = vmatprep.subr.mxu0 %v1775_v2  ;;  %1692 = vmatpush3.msra.mxu1 %v1110_v15 }
  0xf7   :  { %1663 = vmatpush3.msra.mxu0 %v622_v30  ;;  %1693 = vmatprep.subr.mxu1 %v1775_v2 }
  0xf8   :  { %1664 = vmatprep.subr.mxu0 %v1775_v2  ;;  %1694 = vmatpush3.msra.mxu1 %v1117_v19 }
  0xf9   :  { %1665 = vmatpush3.msra.mxu0 %v629_v34  ;;  %1695 = vmatprep.subr.mxu1 %v1775_v2 }
  0xfa   :  { %1667 = vmatmul.mubr.f32.vlgmr.msra.gmra.mxu0 %v571_v59  ;;  %1680 = vmatprep.subr.mxu0 %v1775_v2 }
  0xfb   :  { %1688 = vmatprep.mubr.msk.f32.mxu0 %vm1776_vm1, %v1775_v2  ;;  %1681 = vmatpush3.msra.mxu0 %v1964_v1 }
  0xfc   :  { %1682 = vmatprep.subr.mxu0 %v1775_v2  ;;  %1696 = vmatpush3.msra.mxu1 %v1124_v22 }
  0xfd   :  { %1683 = vmatpush3.msra.mxu0 %v1972_v5  ;;  %1697 = vmatprep.subr.mxu1 %v1775_v2 }
  0xfe   :  { %1684 = vmatprep.subr.mxu0 %v1775_v2  ;;  %1698 = vmatpush3.msra.mxu1 %v1131_v24 }
  0xff   :  { %1685 = vmatpush3.msra.mxu0 %v1983_v9  ;;  %1713 = vmatprep.subr.mxu1 %v1775_v2 }
 0x100   :  { %1686 = vmatprep.subr.mxu0 %v1775_v2 }
 0x101   :  { %1687 = vmatpush3.msra.mxu0 %v1997_v14 }
 0x102   :  { %1702 = vmatprep.subr.mxu0 %v1775_v2 }
 0x1a0   :  { %v668_v25 = vpop.f32.mrf.mxu1 }
 0x1a2   :  { %v1635_v26 = vpop.f32.mrf.mxu1 }
 0x1a8   :  { %v825_v27 = vpop.f32.mrf.mxu1 }
 0x1a9   :  { %v577_v28 = vpop.f32.mrf.mxu0 }
 0x1aa   :  { %v1657_v29 = vpop.f32.mrf.mxu1  ;;  %v578_v32 = vadd.f32 %v1509_v31, %v577_v28 }
 0x1ab   :  { %v1624_v30 = vpop.f32.mrf.mxu0 }
 0x1ac   :  { %v669_v35 = vadd.f32 %v668_v25, %v578_v32 }
 0x1b1   :  { %v748_v33 = vpop.f32.mrf.mxu0 }
 0x1b2   :  { %v983_v34 = vpop.f32.mrf.mxu1  ;;  %v749_v38 = vadd.f32 %v748_v33, %v669_v35 }
 0x1b3   :  { %v1646_v36 = vpop.f32.mrf.mxu0 }
 0x1b4   :  { %v1679_v37 = vpop.f32.mrf.mxu1  ;;  %v826_v39 = vadd.f32 %v825_v27, %v749_v38 }
 0x1ba   :  { %v908_v40 = vpop.f32.mrf.mxu0 }
 0x1bb   :  { %v909_v41 = vadd.f32 %v908_v40, %v826_v39 }
 0x1bc   :  { %v1668_v42 = vpop.f32.mrf.mxu0 }
 0x1bd   :  { %v984_v43 = vadd.f32 %v983_v34, %v909_v41 }
 0x1bf   :  { %v987_v44 = vmax.f32 %v984_v43, 0.0 }
 0x1c1   :  { %v1000_v45 = vsel %vm498_vm2, %v987_v44, 0 }
 0x1c2   :  { %v1071_v46 = vand.u32 4294901760, %v1000_v45 }
 0x1c4   :  { %v1072_v47 = vsub.f32 %v1000_v45, %v1071_v46  ;;  %1700 = vmatmul.mubr.f32.vlgmr.msra.gmra.mxu1 %v1071_v46 }
 0x1c5   :  { %1714 = vmatpush3.msra.mxu1 %v1964_v1  ;;  %1721 = vmatprep.mubr.msk.f32.mxu1 %vm1776_vm1, %v1775_v2 }
 0x1c6   :  { %1715 = vmatprep.subr.mxu1 %v1775_v2  ;;  %v1073_v48 = vand.u32 4294901760, %v1072_v47 }
 0x1c7   :  { %1716 = vmatpush3.msra.mxu1 %v1972_v5 }
 0x1c8   :  { %1717 = vmatprep.subr.mxu1 %v1775_v2  ;;  %v1074_v49 = vsub.f32 %v1072_v47, %v1073_v48 }
 0x1c9   :  { %1718 = vmatpush3.msra.mxu1 %v1983_v9 }
 0x1ca   :  { %1719 = vmatprep.subr.mxu1 %v1775_v2  ;;  %v1075_v50 = vand.u32 4294901760, %v1074_v49 }
 0x1cb   :  { %1720 = vmatpush3.msra.mxu1 %v1997_v14 }
 0x1cc   :  { %1722 = vmatmul.mubr.f32.vlgmr.msra.gmra.mxu1 %v1073_v48  ;;  %1735 = vmatprep.subr.mxu1 %v1775_v2 }
 0x1cd   :  { %1689 = vmatmul.mubr.f32.vlgmr.msra.gmra.mxu0 %v1075_v50  ;;  %1736 = vmatpush3.msra.mxu1 %v1964_v1 }
 0x1ce   :  { %1703 = vmatpush3.msra.mxu0 %v1970_v4  ;;  %1737 = vmatprep.subr.mxu1 %v1775_v2 }
 0x1cf   :  { %1704 = vmatprep.subr.mxu0 %v1775_v2  ;;  %1738 = vmatpush3.msra.mxu1 %v1972_v5 }
 0x1d0   :  { %1705 = vmatpush3.msra.mxu0 %v1981_v8  ;;  %1739 = vmatprep.subr.mxu1 %v1775_v2 }
 0x1d1   :  { %1706 = vmatprep.subr.mxu0 %v1775_v2  ;;  %1740 = vmatpush3.msra.mxu1 %v1983_v9 }
 0x1d2   :  { %1707 = vmatpush3.msra.mxu0 %v1995_v13  ;;  %1741 = vmatprep.subr.mxu1 %v1775_v2 }
 0x1d3   :  { %1708 = vmatprep.subr.mxu0 %v1775_v2  ;;  %1710 = vmatprep.mubr.msk.f32.mxu0 %vm1776_vm1, %v1775_v2 }
 0x1d4   :  { %1709 = vmatpush3.msra.mxu0 %v2006_v18  ;;  %1742 = vmatpush3.msra.mxu1 %v1997_v14 }
 0x1d5   :  { %1743 = vmatprep.mubr.msk.f32.mxu1 %vm1776_vm1, %v1775_v2  ;;  %1711 = vmatmul.mubr.f32.vlgmr.msra.gmra.mxu0 %v1072_v47 }
 0x1d6   :  { %1724 = vmatprep.subr.mxu0 %v1775_v2  ;;  %1744 = vmatmul.mubr.f32.vlgmr.msra.gmra.mxu1 %v1071_v46 }
 0x1d7   :  { %1725 = vmatpush3.msra.mxu0 %v1108_v7  ;;  %1732 = vmatprep.mubr.msk.f32.mxu0 %vm1776_vm1, %v1775_v2 }
 0x1d8   :  { %1726 = vmatprep.subr.mxu0 %v1775_v2 }
 0x1d9   :  { %1727 = vmatpush3.msra.mxu0 %v1115_v12 }
 0x1da   :  { %1728 = vmatprep.subr.mxu0 %v1775_v2 }
 0x1db   :  { %1729 = vmatpush3.msra.mxu0 %v1122_v17 }
 0x1dc   :  { %1730 = vmatprep.subr.mxu0 %v1775_v2 }
 0x1dd   :  { %1731 = vmatpush3.msra.mxu0 %v1129_v21 }
 0x1de   :  { %1733 = vmatmul.mubr.f32.vlgmr.msra.gmra.mxu0 %v1071_v46 }
 0x284   :  { %v1168_v51 = vpop.f32.mrf.mxu1 }
 0x286   :  { %v1701_v52 = vpop.f32.mrf.mxu1 }
 0x28c   :  { %v1325_v53 = vpop.f32.mrf.mxu1 }
 0x28d   :  { %v1077_v54 = vpop.f32.mrf.mxu0 }
 0x28e   :  { %v1723_v55 = vpop.f32.mrf.mxu1  ;;  %v1078_v58 = vadd.f32 %v1510_v57, %v1077_v54 }
 0x28f   :  { %v1690_v56 = vpop.f32.mrf.mxu0 }
 0x290   :  { %v1169_v61 = vadd.f32 %v1168_v51, %v1078_v58 }
 0x295   :  { %v1248_v59 = vpop.f32.mrf.mxu0 }
 0x296   :  { %v1483_v60 = vpop.f32.mrf.mxu1  ;;  %v1249_v63 = vadd.f32 %v1248_v59, %v1169_v61 }
 0x297   :  { %v1712_v62 = vpop.f32.mrf.mxu0 }
 0x298   :  { %v1745_v2 = vpop.f32.mrf.mxu1  ;;  %v1326_v0 = vadd.f32 %v1325_v53, %v1249_v63 }
 0x29e   :  { %v1408_v1 = vpop.f32.mrf.mxu0 }
 0x29f   :  { %v1409_v3 = vadd.f32 %v1408_v1, %v1326_v0 }
 0x2a0   :  { %v1734_v4 = vpop.f32.mrf.mxu0 }
 0x2a1   :  { %v1484_v5 = vadd.f32 %v1483_v60, %v1409_v3 }
 0x2a3   :  { %v1511_v6 = vmul.f32 -1.442695, %v1484_v5 }
 0x2a5   :  { %1749 = vpow2.f32 %v1511_v6 }
 0x2b2   :  { %v1750_v7 = vpop.eup %1749 }
 0x2b3   :  { %v1490_v8 = vadd.f32 1.0, %v1750_v7 }
 0x2b5   :  { %1751 = vrcp.f32 %v1490_v8 }
 0x2c2   :  { %v1752_v9 = vpop.eup %1751 }
 0x2c3   :  { %1493 = vst.msk [vmem:[#allocation2] sm:$0xff] %vm36_vm0, %v1752_v9 }
 0x2c4   :  { %1764 = shalt.err (!%p1761_p4)
}
 0x2c5   :  { %1503 = dma.vmem_to_hbm [thread:$0]  %s1501_s22, 128, %s2081_s7, [#allocation3]  }
 0x2c6   :  { %1773 = dma.done.wait [#allocation3], 128  }
 0x2c7   :  { %1774 = vsyncadd [#allocation3], 4294967168 }
 0x2c8   :  { %1507 = vsyncpa [#allocation3], 1 }

</bundles_post_ra>
